<compile_context>
chip_gen: v7x
topology: tpu7x:2x2x1
jax: 0.10.0
libtpu: 0.0.40
codegen_flags: <defaults>
</compile_context>

<pallas_src>
import jax
import jax.numpy as jnp
from jax import lax
from jax.experimental import pallas as pl
from jax.experimental.pallas import tpu as pltpu

# Fixed 3x3 Gaussian blur weights (the concrete `fn` wrapped by RandomApply).
_GAUSS3 = [[1.0 / 16, 2.0 / 16, 1.0 / 16],
           [2.0 / 16, 4.0 / 16, 2.0 / 16],
           [1.0 / 16, 2.0 / 16, 1.0 / 16]]


def _blur_kernel(x_ref, o_ref):
    # x_ref / o_ref: VMEM (P, H, W) — P whole spatial planes per grid step.
    _, H, W = x_ref.shape
    x = x_ref[...].astype(jnp.float32)

    # Hoisted 0/1 edge masks: built once per grid step, broadcast over the P
    # planes (no per-tap iota / compares / selects).
    row = lax.broadcasted_iota(jnp.int32, (H, W), 0)
    col = lax.broadcasted_iota(jnp.int32, (H, W), 1)
    not_first_col = (col != 0).astype(jnp.float32)
    not_last_col = (col != W - 1).astype(jnp.float32)
    not_first_row = (row != 0).astype(jnp.float32)
    not_last_row = (row != H - 1).astype(jnp.float32)

    # Horizontal [1, 2, 1] pass along lanes (W). jnp.roll wraps; the wrapped
    # column is exactly the zero-padded tap, so masking it restores "same" pad.
    left = jnp.roll(x, 1, axis=-1) * not_first_col
    right = jnp.roll(x, -1, axis=-1) * not_last_col
    h = left + right + x + x

    # Vertical [1, 2, 1] pass along sublanes (H); fold /16 into one final mul.
    up = jnp.roll(h, 1, axis=1) * not_first_row
    down = jnp.roll(h, -1, axis=1) * not_last_row
    out = (up + down + h + h) * jnp.float32(1.0 / 16.0)

    if jnp.issubdtype(o_ref.dtype, jnp.integer):
        out = jnp.round(out)  # round (not truncate) for integer image dtypes
    o_ref[...] = out.astype(o_ref.dtype)


def _choose_planes_per_block(planes, plane_bytes, target_bytes=2 * 1024 * 1024):
    """Largest divisor of `planes` whose block stays under `target_bytes`,
    while keeping >= 2 grid steps so both TensorCores (megacore / v7x) work.
    2 MiB blocks x (in + out) x 2 double-buffers ~= 8 MiB << v7x's 32 MiB
    default-scoped / 64 MiB physical VMEM."""
    best = 1
    for d in range(2, planes + 1):
        if planes % d != 0:
            continue
        if d * plane_bytes > target_bytes:
            break  # divisors only grow from here
        if planes // d < 2:
            continue
        best = d
    return best


def _blur_pallas(x):
    """3x3 Gaussian blur (zero 'same' padding) over NCHW via Pallas."""
    N, C, H, W = x.shape
    planes = N * C
    xr = x.reshape(planes, H, W)
    pp = _choose_planes_per_block(planes, H * W * x.dtype.itemsize)
    grid = (planes // pp,)
    # TODO(synk): for feature maps with W << 128, pack several planes along the
    # lane axis (needs a wrapper transpose) to get unmasked lane-dense stores.
    out = pl.pallas_call(
        _blur_kernel,
        out_shape=jax.ShapeDtypeStruct(xr.shape, xr.dtype),
        grid=grid,
        in_specs=[pl.BlockSpec((pp, H, W), lambda i: (i, 0, 0))],
        out_specs=pl.BlockSpec((pp, H, W), lambda i: (i, 0, 0)),
        compiler_params=pltpu.CompilerParams(
            dimension_semantics=("parallel",)),
    )(xr)
    return out.reshape(N, C, H, W)


def random_apply(x, p, key):
    """Pallas equivalent of RandomApply(fn=gaussian_blur3x3, p=p)(x).

    Python's `random.random() > p -> identity`, i.e. apply fn iff u <= p.
    The decision is a single scalar branch taken with lax.cond, so the
    identity path skips the kernel (no launch, no HBM round-trip).
    """
    u = jax.random.uniform(key, ())
    return lax.cond(u <= p, _blur_pallas, lambda t: t, x)


def _blur_ref(x):
    """Pure-JAX reference of the 3x3 zero-padded Gaussian blur (NCHW)."""
    H, W = x.shape[2], x.shape[3]
    xp = jnp.pad(x.astype(jnp.float32), ((0, 0), (0, 0), (1, 1), (1, 1)))
    out = jnp.zeros(x.shape, jnp.float32)
    for di in range(3):
        for dj in range(3):
            out = out + _GAUSS3[di][dj] * xp[:, :, di:di + H, dj:dj + W]
    return out.astype(x.dtype)


if __name__ == "__main__":
    key = jax.random.PRNGKey(0)
    kx, kdecide = jax.random.split(key)
    x = jax.random.normal(kx, (2, 4, 16, 16), dtype=jnp.float32)
    p = 0.5

    # The fn(x) branch (the Pallas kernel) must match the pure-JAX reference.
    blurred = jax.block_until_ready(_blur_pallas(x))
    assert blurred.shape == x.shape and blurred.dtype == x.dtype
    assert jnp.allclose(blurred, _blur_ref(x), atol=1e-5, rtol=1e-5)

    # Full RandomApply: output must equal exactly one of the two branches.
    out = jax.block_until_ready(jax.jit(random_apply)(x, p, kdecide))
    assert out.shape == x.shape and out.dtype == x.dtype
    identity_ok = bool(jnp.allclose(out, x, atol=1e-5))
    blur_ok = bool(jnp.allclose(out, blurred, atol=1e-5))
    assert identity_ok or blur_ok

    print("KERNEL_OK")
</pallas_src>

<mosaic_0001>
module attributes {stable_mosaic.version = 11 : i64} {
  func.func @_blur_kernel(%arg0: i32, %arg1: memref<4x16x16xf32, #tpu.memory_space<vmem>>, %arg2: memref<4x16x16xf32, #tpu.memory_space<vmem>>) attributes {dimension_semantics = [#tpu.dimension_semantics<parallel>], iteration_bounds = array<i64: 2>, scalar_prefetch = 0 : i64, scratch_operands = 0 : i64, tpu.core_type = #tpu.core_type<tc>, window_params = [{transform_indices = @transform_0, window_bounds = array<i64: 4, 16, 16>}, {transform_indices = @transform_1, window_bounds = array<i64: 4, 16, 16>}]} {
    %c0 = arith.constant 0 : index
    %c0_0 = arith.constant 0 : index
    %c0_1 = arith.constant 0 : index
    %0 = vector.load %arg1[%c0, %c0_0, %c0_1] : memref<4x16x16xf32, #tpu.memory_space<vmem>>, vector<4x16x16xf32>
    %1 = tpu.iota {dimensions = array<i32: 0>} : vector<16x16xi32>
    %2 = tpu.iota {dimensions = array<i32: 1>} : vector<16x16xi32>
    %c0_i32 = arith.constant 0 : i32
    %3 = vector.broadcast %c0_i32 : i32 to vector<16x16xi32>
    %4 = arith.cmpi ne, %2, %3 : vector<16x16xi32>
    %5 = arith.extui %4 : vector<16x16xi1> to vector<16x16xi32>
    %6 = arith.sitofp %5 : vector<16x16xi32> to vector<16x16xf32>
    %c15_i32 = arith.constant 15 : i32
    %7 = vector.broadcast %c15_i32 : i32 to vector<16x16xi32>
    %8 = arith.cmpi ne, %2, %7 : vector<16x16xi32>
    %9 = arith.extui %8 : vector<16x16xi1> to vector<16x16xi32>
    %10 = arith.sitofp %9 : vector<16x16xi32> to vector<16x16xf32>
    %c0_i32_2 = arith.constant 0 : i32
    %11 = vector.broadcast %c0_i32_2 : i32 to vector<16x16xi32>
    %12 = arith.cmpi ne, %1, %11 : vector<16x16xi32>
    %13 = arith.extui %12 : vector<16x16xi1> to vector<16x16xi32>
    %14 = arith.sitofp %13 : vector<16x16xi32> to vector<16x16xf32>
    %c15_i32_3 = arith.constant 15 : i32
    %15 = vector.broadcast %c15_i32_3 : i32 to vector<16x16xi32>
    %16 = arith.cmpi ne, %1, %15 : vector<16x16xi32>
    %17 = arith.extui %16 : vector<16x16xi1> to vector<16x16xi32>
    %18 = arith.sitofp %17 : vector<16x16xi32> to vector<16x16xf32>
    %19 = vector.extract_strided_slice %0 {offsets = [0, 0, 15], sizes = [4, 16, 1], strides = [1, 1, 1]} : vector<4x16x16xf32> to vector<4x16x1xf32>
    %20 = vector.extract_strided_slice %0 {offsets = [0, 0, 0], sizes = [4, 16, 15], strides = [1, 1, 1]} : vector<4x16x16xf32> to vector<4x16x15xf32>
    %21 = tpu.concatenate %19, %20 in 2 : vector<4x16x1xf32>, vector<4x16x15xf32> -> vector<4x16x16xf32>
    %22 = vector.shape_cast %6 : vector<16x16xf32> to vector<1x16x16xf32>
    %23 = vector.broadcast %22 : vector<1x16x16xf32> to vector<4x16x16xf32>
    %24 = arith.mulf %21, %23 : vector<4x16x16xf32>
    %25 = vector.extract_strided_slice %0 {offsets = [0, 0, 1], sizes = [4, 16, 15], strides = [1, 1, 1]} : vector<4x16x16xf32> to vector<4x16x15xf32>
    %26 = vector.extract_strided_slice %0 {offsets = [0, 0, 0], sizes = [4, 16, 1], strides = [1, 1, 1]} : vector<4x16x16xf32> to vector<4x16x1xf32>
    %27 = tpu.concatenate %25, %26 in 2 : vector<4x16x15xf32>, vector<4x16x1xf32> -> vector<4x16x16xf32>
    %28 = vector.shape_cast %10 : vector<16x16xf32> to vector<1x16x16xf32>
    %29 = vector.broadcast %28 : vector<1x16x16xf32> to vector<4x16x16xf32>
    %30 = arith.mulf %27, %29 : vector<4x16x16xf32>
    %31 = arith.addf %24, %30 : vector<4x16x16xf32>
    %32 = arith.addf %31, %0 : vector<4x16x16xf32>
    %33 = arith.addf %32, %0 : vector<4x16x16xf32>
    %34 = vector.extract_strided_slice %33 {offsets = [0, 15, 0], sizes = [4, 1, 16], strides = [1, 1, 1]} : vector<4x16x16xf32> to vector<4x1x16xf32>
    %35 = vector.extract_strided_slice %33 {offsets = [0, 0, 0], sizes = [4, 15, 16], strides = [1, 1, 1]} : vector<4x16x16xf32> to vector<4x15x16xf32>
    %36 = tpu.concatenate %34, %35 in 1 : vector<4x1x16xf32>, vector<4x15x16xf32> -> vector<4x16x16xf32>
    %37 = vector.shape_cast %14 : vector<16x16xf32> to vector<1x16x16xf32>
    %38 = vector.broadcast %37 : vector<1x16x16xf32> to vector<4x16x16xf32>
    %39 = arith.mulf %36, %38 : vector<4x16x16xf32>
    %40 = vector.extract_strided_slice %33 {offsets = [0, 1, 0], sizes = [4, 15, 16], strides = [1, 1, 1]} : vector<4x16x16xf32> to vector<4x15x16xf32>
    %41 = vector.extract_strided_slice %33 {offsets = [0, 0, 0], sizes = [4, 1, 16], strides = [1, 1, 1]} : vector<4x16x16xf32> to vector<4x1x16xf32>
    %42 = tpu.concatenate %40, %41 in 1 : vector<4x15x16xf32>, vector<4x1x16xf32> -> vector<4x16x16xf32>
    %43 = vector.shape_cast %18 : vector<16x16xf32> to vector<1x16x16xf32>
    %44 = vector.broadcast %43 : vector<1x16x16xf32> to vector<4x16x16xf32>
    %45 = arith.mulf %42, %44 : vector<4x16x16xf32>
    %46 = arith.addf %39, %45 : vector<4x16x16xf32>
    %47 = arith.addf %46, %33 : vector<4x16x16xf32>
    %48 = arith.addf %47, %33 : vector<4x16x16xf32>
    %cst = arith.constant 6.250000e-02 : f32
    %49 = vector.broadcast %cst : f32 to vector<4x16x16xf32>
    %50 = arith.mulf %48, %49 : vector<4x16x16xf32>
    %c0_4 = arith.constant 0 : index
    %c0_5 = arith.constant 0 : index
    %c0_6 = arith.constant 0 : index
    %51 = vector.load %arg2[%c0_4, %c0_5, %c0_6] : memref<4x16x16xf32, #tpu.memory_space<vmem>>, vector<4x16x16xf32>
    tpu.vector_store %arg2[%c0_4, %c0_5, %c0_6], %50 {strides = array<i32>} : memref<4x16x16xf32, #tpu.memory_space<vmem>>, vector<4x16x16xf32>,
    return
  }
  func.func @transform_0(%arg0: i32) -> (i32, i32, i32) {
    %c0_i32 = arith.constant 0 : i32
    %c0_i32_0 = arith.constant 0 : i32
    %c0_i32_1 = arith.constant 0 : i32
    return %arg0, %c0_i32, %c0_i32_0 : i32, i32, i32
  }
  func.func @transform_1(%arg0: i32) -> (i32, i32, i32) {
    %c0_i32 = arith.constant 0 : i32
    %c0_i32_0 = arith.constant 0 : i32
    %c0_i32_1 = arith.constant 0 : i32
    return %arg0, %c0_i32, %c0_i32_0 : i32, i32, i32
  }
}

</mosaic_0001>

<bundles_post_ra>
// kernel: tpu_custom_call.1
= control target key start
LH: loop header
LB: loop body
LE: loop exit
PB: predicated region body
PF: predicated region fallthrough
CT: control target
= control target key end

     0   :  { %6 = vsyncpa [#allocation3], 0  ;;  %s1051_s0 = inlined_call_operand.hbm [shape: f32[8,16,16], index: 0, kind: input, shape index: {}]   ;;  %s1052_s1 = inlined_call_operand.hbm [shape: f32[8,16,16], index: 1, kind: output, shape index: {}]  }
   0x1   :  { %8 = vsyncpa [#allocation3 + $0x1], 0 }
   0x2   :  { %9 = vsyncpa [#allocation4], 0 }
   0x3   :  { %11 = vsyncpa [#allocation4 + $0x1], 0  ;;  %s740_s6 = smov 0   ;;  %s742_s7 = smov 0  }
   0x4   :  { %s744_s8 = smov 0   ;;  %s746_s9 = smov 0  }
   0x5 LB: > { %s761_s10 = sadd.s32 4294967295, %s717_s9   ;;  %s542_s11 = sadd.s32 4294967294, %s717_s9   ;;  %s717_s9 = sphi %s746_s9, %s1065_s9   ;;  %s713_s8 = sphi %s744_s8, %s1064_s8   ;;  %s709_s7 = sphi %s742_s7, %s1063_s7   ;;  %s705_s6 = sphi %s740_s6, %s1062_s6  }
   0x6   : > { %s765_s12 = sadd.s32 1, %s717_s9   ;;  %s24_s13 = sadd.s32 1, %s713_s8 }
   0x7   : > { %s21_s14 = ssub.s32 %s717_s9, %s765_s12  ;;  %p31_p0 = scmp.ne.s32.totalorder %s713_s8, %s709_s7 }
   0x8   : > { %p22_p1 = scmp.eq.s32.totalorder %s21_s14, 0  ;;  %p32_p2 = scmp.eq.s32.totalorder %s717_s9, 0 }
   0x9   : > { %p37_p3 = scmp.ne.s32.totalorder %s709_s7, %s705_s6  ;;  %p38_p4 = scmp.eq.s32.totalorder %s761_s10, 0 }
   0xa   : > { %s777_s15 = scalar_select %p22_p1, %s713_s8, %s24_s13  }
   0xb   : > { %p779_p5 = por %p32_p2, %p31_p0  ;;  %p783_p6 = por %p38_p4, %p37_p3 }
   0xc   : > { %p61_p7 = scmp.eq.s32.totalorder %s761_s10, 1  ;;  %p67_p8 = scmp.eq.s32.totalorder %s542_s11, 1 }
   0xd   : > { %p578_p10 = scmp.lt.s32.totalorder %s717_s9, 2  ;;  %s87_s20 = sand.u32 1, %s713_s8  }
   0xe   : > { %p790_p11 = por %p61_p7, %p31_p0  ;;  %p794_p12 = por %p67_p8, %p37_p3 }
   0xf   : > { %s563_s21 = sshll.u32 %s717_s9, 10  ;;  %s545_s22 = sshll.u32 %s87_s20, 6 }
  0x10   : > { %s1056_s18 = scalar_select %p790_p11, 1, 0 }
  0x11   : > { %s1057_s19 = scalar_select %p794_p12, 1, 0 }
  0x12   : > { %s803_s25 = scalar_lea.hbm %s1051_s0, %s563_s21  ;;  %s91_s26 = scalar_lea.vmem [#allocation2], %s545_s22 }
  0x13   : > { %s99_s27 = sshll.u32 %s91_s26, 4  ;;  %p807_p13 = pnand %p578_p10, %p779_p5  ;;  %s811_s27 = int_to_ptr.vmem [resolvable:$true] %s99_s27 }
  0x14   : > { %s813_s29 = scalar_lea.sflag [#allocation3], %s87_s20  ;;  %s621_s30 = scalar_lea.hbm %s803_s25, 1024 }
  0x15   : > { %p622_p0 = scmp.ne.s32.totalorder %s803_s25, %s621_s30  ;;  %p623_p1 = pneg %p807_p13 }
  0x16   : > { %s626_s4 = scalar_lea.hbm %s1051_s0, 2048  ;;  %p627_p4 = scmp.lt.u32.totalorder %s803_s25, %s1051_s0 }
  0x17   : > { %p624_p2 = pnand %p623_p1, %p622_p0  ;;  %p628_p5 = scmp.lt.u32.totalorder %s626_s4, %s621_s30 }
  0x18   : > { %p630_p8 = scmp.lt.u32.totalorder %s621_s30, %s803_s25 }
  0x19   : > { %p625_p3 = pneg %p624_p2  ;;  %p629_p7 = por %p628_p5, %p627_p4 }
  0x1b   : > { %p631_p10 = por %p630_p8, %p629_p7 }
  0x1d   : > { %p632_p9 = pnand %p631_p10, %p625_p3 }
  0x1f   : > { %635 = shalt.err (!%p632_p9)
}
  0x20   : > { %s636_s13 = scalar_lea.vmem %s811_s27, 1024  ;;  %s719_s14 = smov [#allocation2]  }
  0x21   : > { %p637_p0 = scmp.ne.s32.totalorder %s811_s27, %s636_s13  ;;  %s641_s16 = sshll.u32 %s719_s14, 4  ;;  %s642_s16 = int_to_ptr.vmem [resolvable:$false] %s641_s16 }
  0x22   : > { %s643_s20 = scalar_lea.vmem %s642_s16, 2048  ;;  %p644_p11 = scmp.lt.s32.totalorder %s811_s27, %s642_s16 }
  0x23   : > { %p639_p2 = pnand %p637_p0, %p623_p1  ;;  %p645_p4 = scmp.lt.s32.totalorder %s643_s20, %s636_s13 }
  0x25   : > { %p640_p12 = pneg %p639_p2  ;;  %p646_p5 = por %p645_p4, %p644_p11 }
  0x27   : > { %p647_p7 = pnand %p646_p5, %p640_p12 }
  0x29   : > { %650 = shalt.err (!%p647_p7)
}
  0x2a   : > { %s720_s21 = smov 128   ;;  %s721_s22 = smov 8  }
  0x2b   : > { %573 = dma.hbm_to_vmem [thread:$0]  (!%p807_p13), %s803_s25, 1024, %s811_s27, %s813_s29, %s720_s21, %s720_s21, %s721_s22  }
  0x2c   : > { %p549_p9 = scmp.ge.s32.totalorder %s717_s9, 1  ;;  %p107_p1 = scmp.lt.s32.totalorder %s717_s9, 3 }
  0x2e   : > { %p108_p3 = pnand %p549_p9, %p107_p1 }
  0x2f   : > { %s844_s23 = sand.u32 (!%p108_p3), 1, %s709_s7  }
  0x30   : > { %111 = sbr.rel (%p108_p3) target bundleno = 275 (0x113), region = 24  ;;  %s550_s24 = sshll.u32 (!%p108_p3), %s844_s23, 6 }
  0x31   : > { %s114_s26 = scalar_lea.sflag (!%p108_p3), [#allocation3], %s844_s23  ;;  %s117_s30 = scalar_lea.vmem (!%p108_p3), [#allocation2], %s550_s24 }
  0x37   : > { %696 = dma.done.wait (%p783_p6), %s114_s26, 1024  }
  0x38   : > { %698 = vsyncadd (%p783_p6), %s114_s26, 4294966272  ;;  %v854_v0 = vld [vmem:[%s117_s30 + $0x10] sm:$0xff]  ;;  %v856_v1 = vld [vmem:[%s117_s30] sm:$0xff]  ;;  %s722_s25 = smov 113   ;;  %s723_s17 = smov 1   ;;  %v146_v26 = vlaneseq  ;;  %vm225_vm1 = vcmask 7168  }
  0x39   : > { %181 = vrot.lane.b32.xlu1 %v854_v0, %s722_s25  ;;  %177 = vrot.lane.b32.xlu0 %v856_v1, %s722_s25  ;;  %v860_v2 = vld [vmem:[%s117_s30 + $0x18] sm:$0xff]  ;;  %v862_v3 = vld [vmem:[%s117_s30 + $0x8] sm:$0xff]  ;;  %s724_s27 = smov 127   ;;  %s725_s28 = smov 15   ;;  %v726_v35 = vmov 0.0   ;;  %vm290_vm3 = vcmask 121856  }
  0x3a   : > { %v866_v4 = vld [vmem:[%s117_s30 + $0x28] sm:$0xff]  ;;  %v868_v5 = vld [vmem:[%s117_s30 + $0x20] sm:$0xff]  ;;  %v872_v6 = vld [vmem:[%s117_s30 + $0x38] sm:$0xff]  ;;  %v150_v29 = vand.u32 127, %v146_v26  ;;  %v147_v32 = vshrl.u32 %v146_v26, 7  ;;  %vm347_vm5 = vcmask 1040384  }
  0x3b   : > { %v874_v7 = vld [vmem:[%s117_s30 + $0x30] sm:$0xff]  ;;  %vm376_vm7 = vcmask 1046528   ;;  %vm445_vm8 = vcmask 130048   ;;  %s966_s29 = scalar_lea.vmem [#allocation5], %s550_s24  ;;  %s565_s2 = sshll.u32 %s761_s10, 10 }
  0x3c   : > { %vm151_vm0 = vcmp.ne.s32.totalorder %v150_v29, 0  ;;  %vm154_vm2 = vcmp.ne.s32.totalorder %v150_v29, 15  ;;  %v148_v40 = vadd.s32 8, %v147_v32  ;;  %vm157_vm4 = vcmp.ne.s32.totalorder %v147_v32, 0  ;;  %s469_s3 = sshll.u32 %s966_s29, 4  ;;  %s1001_s11 = scalar_lea.hbm %s1052_s1, %s565_s2  ;;  %s1003_s3 = int_to_ptr.vmem [resolvable:$true] %s469_s3 }
  0x3d   : > { %183 = vrot.lane.b32.xlu1 %v860_v2, %s722_s25  ;;  %179 = vrot.lane.b32.xlu0 %v862_v3, %s722_s25  ;;  %v552_v36 = vsel %vm151_vm0, 1.0, %v726_v35  ;;  %v908_v39 = vsel %vm154_vm2, 1.0, %v726_v35  ;;  %s455_s10 = scalar_lea.sflag [#allocation4], %s844_s23  ;;  %s651_s13 = scalar_lea.vmem %s1003_s3, 1024 }
  0x3e   : > { %vm164_vm6 = vcmp.ne.s32.totalorder %v148_v40, 15  ;;  %p652_p6 = scmp.ne.s32.totalorder %s1003_s3, %s651_s13  ;;  %p1059_p11 = scmp.ne.s32.totalorder %s1056_s18, 0 }
  0x3f   : > { %s727_s14 = smov [#allocation5]  }
  0x40   : > { %p653_p12 = pnand %p652_p6, %p1059_p11  ;;  %s655_s16 = sshll.u32 %s727_s14, 4  ;;  %s656_s16 = int_to_ptr.vmem [resolvable:$false] %s655_s16 }
  0x41   : > { %187 = vrot.lane.b32.xlu1 %v866_v4, %s722_s25  ;;  %185 = vrot.lane.b32.xlu0 %v868_v5, %s722_s25  ;;  %s657_s20 = scalar_lea.vmem %s656_s16, 2048  ;;  %p658_p8 = scmp.lt.s32.totalorder %s1003_s3, %s656_s16 }
  0x42   : > { %p654_p13 = pneg %p653_p12  ;;  %p659_p10 = scmp.lt.s32.totalorder %s657_s20, %s651_s13 }
  0x44   : > { %p660_p0 = por %p659_p10, %p658_p8 }
  0x45   : > { %191 = vrot.lane.b32.xlu1 %v872_v6, %s722_s25  ;;  %189 = vrot.lane.b32.xlu0 %v874_v7, %s722_s25 }
  0x46   : > { %p661_p2 = pnand %p660_p0, %p654_p13 }
  0x49   : > { %203 = vrot.lane.b32.xlu1 %v862_v3, %s723_s17  ;;  %201 = vrot.lane.b32.xlu0 %v856_v1, %s723_s17 }
  0x4d   : > { %207 = vrot.lane.b32.xlu1 %v860_v2, %s723_s17  ;;  %205 = vrot.lane.b32.xlu0 %v854_v0, %s723_s17 }
  0x51   : > { %211 = vrot.lane.b32.xlu1 %v866_v4, %s723_s17  ;;  %209 = vrot.lane.b32.xlu0 %v868_v5, %s723_s17 }
  0x55   : > { %215 = vrot.lane.b32.xlu1 %v872_v6, %s723_s17  ;;  %213 = vrot.lane.b32.xlu0 %v874_v7, %s723_s17 }
  0x59   : > { %244 = vrot.lane.b32.xlu1 %v862_v3, %s724_s27  ;;  %242 = vrot.lane.b32.xlu0 %v856_v1, %s724_s27 }
  0x5d   : > { %248 = vrot.lane.b32.xlu1 %v860_v2, %s724_s27  ;;  %246 = vrot.lane.b32.xlu0 %v854_v0, %s724_s27 }
  0x61   : > { %252 = vrot.lane.b32.xlu1 %v866_v4, %s724_s27  ;;  %250 = vrot.lane.b32.xlu0 %v868_v5, %s724_s27 }
  0x65   : > { %256 = vrot.lane.b32.xlu1 %v872_v6, %s724_s27  ;;  %254 = vrot.lane.b32.xlu0 %v874_v7, %s724_s27 }
  0x69   : > { %268 = vrot.lane.b32.xlu1 %v862_v3, %s725_s28  ;;  %266 = vrot.lane.b32.xlu0 %v856_v1, %s725_s28 }
  0x6d   : > { %272 = vrot.lane.b32.xlu1 %v860_v2, %s725_s28  ;;  %270 = vrot.lane.b32.xlu0 %v854_v0, %s725_s28 }
  0x71   : > { %276 = vrot.lane.b32.xlu1 %v866_v4, %s725_s28  ;;  %274 = vrot.lane.b32.xlu0 %v868_v5, %s725_s28 }
  0x75   : > { %280 = vrot.lane.b32.xlu1 %v872_v6, %s725_s28  ;;  %278 = vrot.lane.b32.xlu0 %v874_v7, %s725_s28 }
  0xab   : > { %v182_v8 = vpop.permute.xlu1 %181  ;;  %v178_v9 = vpop.permute.xlu0 %177 }
  0xaf   : > { %v184_v10 = vpop.permute.xlu1 %183  ;;  %v180_v11 = vpop.permute.xlu0 %179 }
  0xb3   : > { %v188_v12 = vpop.permute.xlu1 %187  ;;  %v186_v13 = vpop.permute.xlu0 %185 }
  0xb7   : > { %v192_v14 = vpop.permute.xlu1 %191  ;;  %v190_v15 = vpop.permute.xlu0 %189 }
  0xbb   : > { %v204_v16 = vpop.permute.xlu1 %203  ;;  %v202_v17 = vpop.permute.xlu0 %201 }
  0xbc   : > { %v227_v37 = vsel %vm225_vm1, %v180_v11, %v204_v16  ;;  %v226_v38 = vsel %vm225_vm1, %v178_v9, %v202_v17 }
  0xbd   : > { %v235_v47 = vmul.f32 %v552_v36, %v227_v37  ;;  %v234_v48 = vmul.f32 %v552_v36, %v226_v38 }
  0xbf   : > { %v208_v18 = vpop.permute.xlu1 %207  ;;  %v206_v19 = vpop.permute.xlu0 %205 }
  0xc0   : > { %v229_v41 = vsel %vm225_vm1, %v184_v10, %v208_v18  ;;  %v228_v42 = vsel %vm225_vm1, %v182_v8, %v206_v19 }
  0xc1   : > { %v237_v51 = vmul.f32 %v552_v36, %v229_v41  ;;  %v236_v52 = vmul.f32 %v552_v36, %v228_v42 }
  0xc3   : > { %v212_v20 = vpop.permute.xlu1 %211  ;;  %v210_v21 = vpop.permute.xlu0 %209 }
  0xc4   : > { %v231_v53 = vsel %vm225_vm1, %v188_v12, %v212_v20  ;;  %v230_v54 = vsel %vm225_vm1, %v186_v13, %v210_v21  ;;  %v927_v13 = vsel %vm157_vm4, 1.0, %v726_v35 }
  0xc5   : > { %v239_v11 = vmul.f32 %v552_v36, %v231_v53  ;;  %v238_v12 = vmul.f32 %v552_v36, %v230_v54 }
  0xc7   : > { %v216_v22 = vpop.permute.xlu1 %215  ;;  %v214_v23 = vpop.permute.xlu0 %213 }
  0xc8   : > { %v233_v59 = vsel %vm225_vm1, %v192_v14, %v216_v22  ;;  %v232_v60 = vsel %vm225_vm1, %v190_v15, %v214_v23  ;;  %v930_v14 = vsel %vm164_vm6, 1.0, %v726_v35 }
  0xc9   : > { %v241_v21 = vmul.f32 %v552_v36, %v233_v59  ;;  %v240_v22 = vmul.f32 %v552_v36, %v232_v60 }
  0xcb   : > { %v245_v24 = vpop.permute.xlu1 %244  ;;  %v243_v25 = vpop.permute.xlu0 %242 }
  0xcf   : > { %v249_v27 = vpop.permute.xlu1 %248  ;;  %v247_v28 = vpop.permute.xlu0 %246 }
  0xd3   : > { %v253_v30 = vpop.permute.xlu1 %252  ;;  %v251_v31 = vpop.permute.xlu0 %250 }
  0xd7   : > { %v902_v33 = vpop.permute.xlu1 %256  ;;  %v904_v34 = vpop.permute.xlu0 %254 }
  0xdb   : > { %v269_v43 = vpop.permute.xlu1 %268  ;;  %v267_v44 = vpop.permute.xlu0 %266 }
  0xdc   : > { %v292_v45 = vsel %vm290_vm3, %v245_v24, %v269_v43  ;;  %v291_v46 = vsel %vm290_vm3, %v243_v25, %v267_v44 }
  0xdd   : > { %v300_v49 = vmul.f32 %v908_v39, %v292_v45  ;;  %v299_v50 = vmul.f32 %v908_v39, %v291_v46 }
  0xdf   : > { %v308_v55 = vadd.f32 %v300_v49, %v235_v47  ;;  %v307_v56 = vadd.f32 %v299_v50, %v234_v48  ;;  %v273_v57 = vpop.permute.xlu1 %272  ;;  %v271_v58 = vpop.permute.xlu0 %270 }
  0xe0   : > { %v294_v61 = vsel %vm290_vm3, %v249_v27, %v273_v57  ;;  %v293_v62 = vsel %vm290_vm3, %v247_v28, %v271_v58 }
  0xe1   : > { %v316_v63 = vadd.f32 %v308_v55, %v862_v3  ;;  %v315_v8 = vadd.f32 %v307_v56, %v856_v1  ;;  %v302_v9 = vmul.f32 %v908_v39, %v294_v61  ;;  %v301_v10 = vmul.f32 %v908_v39, %v293_v62 }
  0xe3   : > { %v324_v15 = vadd.f32 %v316_v63, %v862_v3  ;;  %v323_v16 = vadd.f32 %v315_v8, %v856_v1  ;;  %v310_v17 = vadd.f32 %v302_v9, %v237_v51  ;;  %v309_v18 = vadd.f32 %v301_v10, %v236_v52  ;;  %v277_v19 = vpop.permute.xlu1 %276  ;;  %v275_v20 = vpop.permute.xlu0 %274 }
  0xe4   : > { %v296_v23 = vsel %vm290_vm3, %v253_v30, %v277_v19  ;;  %v295_v24 = vsel %vm290_vm3, %v251_v31, %v275_v20 }
  0xe5   : > { %v335_v25 = vrot.slane %v324_v15, 7  ;;  %v378_v26 = vrot.slane %v324_v15, 1  ;;  %v348_v27 = vrot.slane %v323_v16, 7  ;;  %v377_v28 = vrot.slane %v323_v16, 1 }
  0xe6   : > { %v318_v29 = vadd.f32 %v310_v17, %v860_v2  ;;  %v317_v3 = vadd.f32 %v309_v18, %v854_v0  ;;  %v304_v1 = vmul.f32 %v908_v39, %v296_v23  ;;  %v303_v32 = vmul.f32 %v908_v39, %v295_v24 }
  0xe7   : > { %v349_v35 = vsel %vm347_vm5, %v348_v27, %v335_v25  ;;  %v364_v36 = vsel %vm347_vm5, %v335_v25, %v348_v27  ;;  %v379_v30 = vsel %vm376_vm7, %v377_v28, %v378_v26  ;;  %v401_v31 = vsel %vm376_vm7, %v378_v26, %v377_v28  ;;  %v281_v37 = vpop.permute.xlu1 %280  ;;  %v279_v38 = vpop.permute.xlu0 %278 }
  0xe8   : > { %v368_v40 = vmul.f32 %v927_v13, %v364_v36  ;;  %v406_v41 = vmul.f32 %v930_v14, %v401_v31  ;;  %v326_v42 = vadd.f32 %v318_v29, %v860_v2  ;;  %v325_v43 = vadd.f32 %v317_v3, %v854_v0 }
  0xe9   : > { %v312_v44 = vadd.f32 %v304_v1, %v239_v11  ;;  %v311_v45 = vadd.f32 %v303_v32, %v238_v12  ;;  %v298_v46 = vsel %vm290_vm3, %v902_v33, %v281_v37  ;;  %v297_v47 = vsel %vm290_vm3, %v904_v34, %v279_v38 }
  0xea   : > { %v413_v48 = vadd.f32 %v379_v30, %v368_v40  ;;  %v414_v49 = vadd.f32 %v406_v41, %v349_v35  ;;  %v336_v50 = vrot.slane %v326_v42, 7  ;;  %v381_v51 = vrot.slane %v326_v42, 1 }
  0xeb   : > { %v350_v52 = vrot.slane %v325_v43, 7  ;;  %v380_v53 = vrot.slane %v325_v43, 1  ;;  %v320_v54 = vadd.f32 %v312_v44, %v866_v4  ;;  %v319_v2 = vadd.f32 %v311_v45, %v868_v5 }
  0xec   : > { %v421_v55 = vadd.f32 %v413_v48, %v323_v16  ;;  %v422_v0 = vadd.f32 %v414_v49, %v324_v15  ;;  %v306_v56 = vmul.f32 %v908_v39, %v298_v46  ;;  %v305_v57 = vmul.f32 %v908_v39, %v297_v47 }
  0xed   : > { %v351_v33 = vsel %vm347_vm5, %v350_v52, %v336_v50  ;;  %v365_v34 = vsel %vm347_vm5, %v336_v50, %v350_v52  ;;  %v382_v58 = vsel %vm376_vm7, %v380_v53, %v381_v51  ;;  %v402_v59 = vsel %vm376_vm7, %v381_v51, %v380_v53 }
  0xee   : > { %v429_v60 = vadd.f32 %v421_v55, %v323_v16  ;;  %v430_v61 = vadd.f32 %v422_v0, %v324_v15  ;;  %v370_v62 = vmul.f32 %v927_v13, %v365_v34  ;;  %v408_v63 = vmul.f32 %v930_v14, %v402_v59 }
  0xef   : > { %v328_v8 = vadd.f32 %v320_v54, %v866_v4  ;;  %v327_v9 = vadd.f32 %v319_v2, %v868_v5  ;;  %v314_v39 = vadd.f32 %v306_v56, %v241_v21  ;;  %v313_v10 = vadd.f32 %v305_v57, %v240_v22 }
  0xf0   : > { %v437_v11 = vmul.f32 0.0625, %v429_v60  ;;  %v438_v12 = vmul.f32 0.0625, %v430_v61  ;;  %v415_v17 = vadd.f32 %v382_v58, %v370_v62  ;;  %v416_v18 = vadd.f32 %v408_v63, %v351_v33 }
  0xf1   : > { %v337_v19 = vrot.slane %v328_v8, 7  ;;  %v384_v20 = vrot.slane %v328_v8, 1  ;;  %v352_v23 = vrot.slane %v327_v9, 7  ;;  %v383_v16 = vrot.slane %v327_v9, 1 }
  0xf2   : > { %446 = vst.msk [vmem:[%s966_s29] sm:$0xff] %vm445_vm8, %v437_v11  ;;  %447 = vst.msk [vmem:[%s966_s29 + $0x8] sm:$0xff] %vm445_vm8, %v438_v12  ;;  %v423_v4 = vadd.f32 %v415_v17, %v325_v43  ;;  %v424_v5 = vadd.f32 %v416_v18, %v326_v42  ;;  %v322_v15 = vadd.f32 %v314_v39, %v872_v6 }
  0xf3   : > { %v321_v21 = vadd.f32 %v313_v10, %v874_v7  ;;  %v366_v22 = vsel %vm347_vm5, %v337_v19, %v352_v23  ;;  %v403_v24 = vsel %vm376_vm7, %v384_v20, %v383_v16  ;;  %v353_v29 = vsel %vm347_vm5, %v352_v23, %v337_v19 }
  0xf4   : > { %v431_v25 = vadd.f32 %v423_v4, %v325_v43  ;;  %v432_v26 = vadd.f32 %v424_v5, %v326_v42  ;;  %v372_v27 = vmul.f32 %v927_v13, %v366_v22  ;;  %v410_v28 = vmul.f32 %v930_v14, %v403_v24 }
  0xf5   : > { %v385_v3 = vsel %vm376_vm7, %v383_v16, %v384_v20  ;;  %v330_v1 = vadd.f32 %v322_v15, %v872_v6  ;;  %v329_v32 = vadd.f32 %v321_v21, %v874_v7 }
  0xf6   : > { %v439_v35 = vmul.f32 0.0625, %v431_v25  ;;  %v440_v36 = vmul.f32 0.0625, %v432_v26  ;;  %v417_v30 = vadd.f32 %v385_v3, %v372_v27  ;;  %v418_v31 = vadd.f32 %v410_v28, %v353_v29 }
  0xf7   : > { %v338_v37 = vrot.slane %v330_v1, 7  ;;  %v387_v38 = vrot.slane %v330_v1, 1  ;;  %v354_v40 = vrot.slane %v329_v32, 7  ;;  %v386_v41 = vrot.slane %v329_v32, 1 }
  0xf8   : > { %448 = vst.msk [vmem:[%s966_s29 + $0x10] sm:$0xff] %vm445_vm8, %v439_v35  ;;  %449 = vst.msk [vmem:[%s966_s29 + $0x18] sm:$0xff] %vm445_vm8, %v440_v36  ;;  %v425_v42 = vadd.f32 %v417_v30, %v327_v9  ;;  %v426_v43 = vadd.f32 %v418_v31, %v328_v8 }
  0xf9   : > { %v367_v6 = vsel %vm347_vm5, %v338_v37, %v354_v40  ;;  %v404_v7 = vsel %vm376_vm7, %v387_v38, %v386_v41  ;;  %v355_v48 = vsel %vm347_vm5, %v354_v40, %v338_v37  ;;  %v388_v49 = vsel %vm376_vm7, %v386_v41, %v387_v38 }
  0xfa   : > { %v433_v44 = vadd.f32 %v425_v42, %v327_v9  ;;  %v434_v45 = vadd.f32 %v426_v43, %v328_v8  ;;  %v374_v46 = vmul.f32 %v927_v13, %v367_v6  ;;  %v412_v47 = vmul.f32 %v930_v14, %v404_v7 }
  0xfc   : > { %v441_v50 = vmul.f32 0.0625, %v433_v44  ;;  %v442_v51 = vmul.f32 0.0625, %v434_v45  ;;  %v419_v52 = vadd.f32 %v388_v49, %v374_v46  ;;  %v420_v53 = vadd.f32 %v412_v47, %v355_v48 }
  0xfe   : > { %450 = vst.msk [vmem:[%s966_s29 + $0x20] sm:$0xff] %vm445_vm8, %v441_v50  ;;  %451 = vst.msk [vmem:[%s966_s29 + $0x28] sm:$0xff] %vm445_vm8, %v442_v51  ;;  %v427_v54 = vadd.f32 %v419_v52, %v329_v32  ;;  %v428_v13 = vadd.f32 %v420_v53, %v330_v1 }
 0x100   : > { %v435_v14 = vadd.f32 %v427_v54, %v329_v32  ;;  %v436_v2 = vadd.f32 %v428_v13, %v330_v1 }
 0x102   : > { %v443_v55 = vmul.f32 0.0625, %v435_v14  ;;  %v444_v0 = vmul.f32 0.0625, %v436_v2 }
 0x104   : > { %452 = vst.msk [vmem:[%s966_s29 + $0x30] sm:$0xff] %vm445_vm8, %v443_v55  ;;  %453 = vst.msk [vmem:[%s966_s29 + $0x38] sm:$0xff] %vm445_vm8, %v444_v0 }
 0x105   : > { %664 = shalt.err (!%p661_p2)
}
 0x106   : > { %s665_s21 = scalar_lea.hbm %s1001_s11, 1024  ;;  %s669_s26 = scalar_lea.hbm %s1052_s1, 2048 }
 0x107   : > { %p666_p4 = scmp.ne.s32.totalorder %s1001_s11, %s665_s21  ;;  %p670_p9 = scmp.lt.u32.totalorder %s1001_s11, %s1052_s1 }
 0x108   : > { %p671_p1 = scmp.lt.u32.totalorder %s669_s26, %s665_s21  ;;  %p673_p6 = scmp.lt.u32.totalorder %s665_s21, %s1001_s11 }
 0x109   : > { %p667_p5 = pnand %p666_p4, %p1059_p11 }
 0x10a   : > { %p672_p3 = por %p671_p1, %p670_p9 }
 0x10b   : > { %p668_p7 = pneg %p667_p5 }
 0x10c   : > { %p674_p12 = por %p673_p6, %p672_p3 }
 0x10e   : > { %p675_p13 = pnand %p674_p12, %p668_p7 }
 0x110   : > { %678 = shalt.err (!%p675_p13)
}
 0x111   : > { %s728_s17 = smov 128   ;;  %s729_s27 = smov 8  }
 0x112   : > { %568 = dma.vmem_to_hbm [thread:$0]  (%p1059_p11), %s1003_s3, 1024, %s1001_s11, %s455_s10, %s728_s17, %s728_s17, %s729_s27  }
 0x113 PF: > { %s484_s28 = sand.u32 1, %s705_s6   ;;  %p1060_p8 = scmp.ne.s32.totalorder %s1057_s19, 0 }
 0x114   : > { %p1061_p10 = scmp.ge.s32.totalorder %s717_s9, 2  ;;  %s485_s29 = scalar_lea.sflag [#allocation4], %s484_s28 }
 0x116   : > { %p575_p0 = pnand %p1061_p10, %p1060_p8 }
 0x118   : > { %700 = dma.done.wait (!%p575_p0), %s485_s29, 1024  }
 0x119   : > { %702 = vsyncadd (!%p575_p0), %s485_s29, 4294966272  ;;  %p14_p2 = scmp.ge.s32.totalorder %s765_s12, 4   ;;  %s1062_s6 = smov %s709_s7 }
 0x11a   : > { %s1063_s7 = smov %s713_s8  ;;  %s1064_s8 = smov %s777_s15 }
 0x11b   : > { %s1065_s9 = smov %s765_s12  ;;  %16 = sbr.rel (!%p14_p2) target bundleno = 5 (0x5), region = 69 }
 0x122   :  { %490 = vsyncpa [#allocation3], 1 }
 0x123   :  { %492 = vsyncpa [#allocation3 + $0x1], 1 }
 0x124   :  { %493 = vsyncpa [#allocation4], 1 }
 0x125   :  { %495 = vsyncpa [#allocation4 + $0x1], 1 }

</bundles_post_ra>
